<compile_context>
chip_gen: v7x
topology: tpu7x:2x2x1
jax: 0.10.0
libtpu: 0.0.40
codegen_flags: <defaults>
</compile_context>

<pallas_src>
import jax
import jax.numpy as jnp
from jax.experimental import pallas as pl
from jax.experimental.pallas import tpu as pltpu

LANE = 128
SUBLANE = 8


def _round_up(x, m):
    return ((x + m - 1) // m) * m


def box_enc_kernel(x_ref, w1_ref, b1_ref, w2_ref, b2_ref, o_ref):
    # hidden = ReLU(x @ W1 + b1)      (tile_n, h_pad), f32 accumulate
    hidden = jnp.dot(x_ref[...], w1_ref[...],
                     preferred_element_type=jnp.float32) + b1_ref[...]
    hidden = jnp.maximum(hidden, 0.0)
    # out = hidden @ W2 + b2          (tile_n, d_pad)
    out = jnp.dot(hidden.astype(w2_ref.dtype), w2_ref[...],
                  preferred_element_type=jnp.float32) + b2_ref[...]
    o_ref[...] = out.astype(o_ref.dtype)


def box_enc(k_vec, w1, b1, w2, b2, *, tile_n=512):
    """k_vec: (N, k), w1: (k, h), b1: (h,), w2: (h, d), b2: (d,) -> (N, d)."""
    n, k = k_vec.shape
    k_w, h = w1.shape
    assert k_w == k
    h_w, d = w2.shape
    assert h_w == h
    dtype = k_vec.dtype

    # Lane-dense padding of feature dims (exact under zero padding).
    k_pad = _round_up(k, LANE)   # 54  -> 128
    h_pad = _round_up(h, LANE)   # 300 -> 384
    d_pad = _round_up(d, LANE)   # 100 -> 128

    # Row tiling: single grid step for small N, big tiles for large N.
    tile = min(tile_n, _round_up(n, SUBLANE))
    tile = _round_up(tile, SUBLANE)
    n_pad = _round_up(n, tile)

    x_p = jnp.zeros((n_pad, k_pad), dtype).at[:n, :k].set(k_vec)
    w1_p = jnp.zeros((k_pad, h_pad), w1.dtype).at[:k, :h].set(w1)
    b1_p = jnp.zeros((1, h_pad), b1.dtype).at[0, :h].set(b1)
    w2_p = jnp.zeros((h_pad, d_pad), w2.dtype).at[:h, :d].set(w2)
    b2_p = jnp.zeros((1, d_pad), b2.dtype).at[0, :d].set(b2)

    grid = (n_pad // tile,)

    out = pl.pallas_call(
        box_enc_kernel,
        out_shape=jax.ShapeDtypeStruct((n_pad, d_pad), dtype),
        grid_spec=pltpu.PrefetchScalarGridSpec(
            num_scalar_prefetch=0,
            grid=grid,
            in_specs=[
                pl.BlockSpec((tile, k_pad), lambda i: (i, 0)),    # input rows tile
                pl.BlockSpec((k_pad, h_pad), lambda i: (0, 0)),   # W1 (resident)
                pl.BlockSpec((1, h_pad), lambda i: (0, 0)),       # b1
                pl.BlockSpec((h_pad, d_pad), lambda i: (0, 0)),   # W2 (resident)
                pl.BlockSpec((1, d_pad), lambda i: (0, 0)),       # b2
            ],
            out_specs=pl.BlockSpec((tile, d_pad), lambda i: (i, 0)),
        ),
        compiler_params=pltpu.CompilerParams(
            dimension_semantics=("parallel",)),
    )(x_p, w1_p, b1_p, w2_p, b2_p)

    # Slice away row/lane padding.
    return out[:n, :d]


def reference(k_vec, w1, b1, w2, b2):
    hidden = jnp.maximum(k_vec @ w1 + b1, 0.0)
    return hidden @ w2 + b2


if __name__ == "__main__":
    # Module defaults: k=54, d=100, h=300.
    k_dim, h_dim, d_dim = 54, 300, 100
    N = 32

    key = jax.random.PRNGKey(0)
    k_x, k_w1, k_b1, k_w2, k_b2 = jax.random.split(key, 5)

    x = jax.random.normal(k_x, (N, k_dim), dtype=jnp.float32)

    # Deterministic synthetic params, stored (in, out) so forward is x @ W + b
    # (equivalent to PyTorch nn.Linear's x @ W.T + b with W of shape (out, in)).
    w1 = jax.random.normal(k_w1, (k_dim, h_dim), dtype=jnp.float32) * (1.0 / jnp.sqrt(k_dim))
    b1 = jax.random.normal(k_b1, (h_dim,), dtype=jnp.float32) * 0.01
    w2 = jax.random.normal(k_w2, (h_dim, d_dim), dtype=jnp.float32) * (1.0 / jnp.sqrt(h_dim))
    b2 = jax.random.normal(k_b2, (d_dim,), dtype=jnp.float32) * 0.01

    d_vec = box_enc(x, w1, b1, w2, b2)
    d_vec = jax.block_until_ready(d_vec)

    ref = reference(x, w1, b1, w2, b2)
    assert d_vec.shape == (N, d_dim)
    assert jnp.allclose(d_vec, ref, atol=1e-4, rtol=1e-4)

    print("KERNEL_OK")
</pallas_src>

<mosaic_0001>
module attributes {stable_mosaic.version = 11 : i64} {
  func.func @box_enc_kernel(%arg0: i32, %arg1: memref<32x128xf32, #tpu.memory_space<vmem>>, %arg2: memref<128x384xf32, #tpu.memory_space<vmem>>, %arg3: memref<1x384xf32, #tpu.memory_space<vmem>>, %arg4: memref<384x128xf32, #tpu.memory_space<vmem>>, %arg5: memref<1x128xf32, #tpu.memory_space<vmem>>, %arg6: memref<32x128xf32, #tpu.memory_space<vmem>>) attributes {dimension_semantics = [#tpu.dimension_semantics<parallel>], iteration_bounds = array<i64: 1>, scalar_prefetch = 0 : i64, scratch_operands = 0 : i64, tpu.core_type = #tpu.core_type<tc>, window_params = [{transform_indices = @transform_0, window_bounds = array<i64: 32, 128>}, {pipeline_mode = #tpu.pipeline_mode<synchronous>, transform_indices = @transform_1, window_bounds = array<i64: 128, 384>}, {pipeline_mode = #tpu.pipeline_mode<synchronous>, transform_indices = @transform_2, window_bounds = array<i64: 1, 384>}, {pipeline_mode = #tpu.pipeline_mode<synchronous>, transform_indices = @transform_3, window_bounds = array<i64: 384, 128>}, {pipeline_mode = #tpu.pipeline_mode<synchronous>, transform_indices = @transform_4, window_bounds = array<i64: 1, 128>}, {transform_indices = @transform_5, window_bounds = array<i64: 32, 128>}]} {
    %c0 = arith.constant 0 : index
    %c0_0 = arith.constant 0 : index
    %0 = vector.load %arg1[%c0, %c0_0] : memref<32x128xf32, #tpu.memory_space<vmem>>, vector<32x128xf32>
    %c0_1 = arith.constant 0 : index
    %c0_2 = arith.constant 0 : index
    %1 = vector.load %arg2[%c0_1, %c0_2] : memref<128x384xf32, #tpu.memory_space<vmem>>, vector<128x384xf32>
    %cst = arith.constant dense<0.000000e+00> : vector<32x384xf32>
    %2 = tpu.matmul %0, %1, %cst {dimension_numbers = #tpu.dot_dimension_numbers<[1], [0], [0], [1], [0, 0, 1, 1], [], []>} : vector<32x128xf32>, vector<128x384xf32>, vector<32x384xf32> -> vector<32x384xf32>
    %c0_3 = arith.constant 0 : index
    %c0_4 = arith.constant 0 : index
    %3 = vector.load %arg3[%c0_3, %c0_4] : memref<1x384xf32, #tpu.memory_space<vmem>>, vector<1x384xf32>
    %4 = vector.broadcast %3 : vector<1x384xf32> to vector<32x384xf32>
    %5 = arith.addf %2, %4 : vector<32x384xf32>
    %cst_5 = arith.constant 0.000000e+00 : f32
    %6 = vector.broadcast %cst_5 : f32 to vector<32x384xf32>
    %7 = arith.maximumf %5, %6 : vector<32x384xf32>
    %c0_6 = arith.constant 0 : index
    %c0_7 = arith.constant 0 : index
    %8 = vector.load %arg4[%c0_6, %c0_7] : memref<384x128xf32, #tpu.memory_space<vmem>>, vector<384x128xf32>
    %cst_8 = arith.constant dense<0.000000e+00> : vector<32x128xf32>
    %9 = tpu.matmul %7, %8, %cst_8 {dimension_numbers = #tpu.dot_dimension_numbers<[1], [0], [0], [1], [0, 0, 1, 1], [], []>} : vector<32x384xf32>, vector<384x128xf32>, vector<32x128xf32> -> vector<32x128xf32>
    %c0_9 = arith.constant 0 : index
    %c0_10 = arith.constant 0 : index
    %10 = vector.load %arg5[%c0_9, %c0_10] : memref<1x128xf32, #tpu.memory_space<vmem>>, vector<1x128xf32>
    %11 = vector.broadcast %10 : vector<1x128xf32> to vector<32x128xf32>
    %12 = arith.addf %9, %11 : vector<32x128xf32>
    %c0_11 = arith.constant 0 : index
    %c0_12 = arith.constant 0 : index
    %13 = vector.load %arg6[%c0_11, %c0_12] : memref<32x128xf32, #tpu.memory_space<vmem>>, vector<32x128xf32>
    tpu.vector_store %arg6[%c0_11, %c0_12], %12 {strides = array<i32>} : memref<32x128xf32, #tpu.memory_space<vmem>>, vector<32x128xf32>,
    return
  }
  func.func @transform_0(%arg0: i32) -> (i32, i32) {
    %c0_i32 = arith.constant 0 : i32
    %c0_i32_0 = arith.constant 0 : i32
    return %arg0, %c0_i32 : i32, i32
  }
  func.func @transform_1(%arg0: i32) -> (i32, i32) {
    %c0_i32 = arith.constant 0 : i32
    %c0_i32_0 = arith.constant 0 : i32
    %c0_i32_1 = arith.constant 0 : i32
    return %c0_i32, %c0_i32_0 : i32, i32
  }
  func.func @transform_2(%arg0: i32) -> (i32, i32) {
    %c0_i32 = arith.constant 0 : i32
    %c0_i32_0 = arith.constant 0 : i32
    %c0_i32_1 = arith.constant 0 : i32
    return %c0_i32, %c0_i32_0 : i32, i32
  }
  func.func @transform_3(%arg0: i32) -> (i32, i32) {
    %c0_i32 = arith.constant 0 : i32
    %c0_i32_0 = arith.constant 0 : i32
    %c0_i32_1 = arith.constant 0 : i32
    return %c0_i32, %c0_i32_0 : i32, i32
  }
  func.func @transform_4(%arg0: i32) -> (i32, i32) {
    %c0_i32 = arith.constant 0 : i32
    %c0_i32_0 = arith.constant 0 : i32
    %c0_i32_1 = arith.constant 0 : i32
    return %c0_i32, %c0_i32_0 : i32, i32
  }
  func.func @transform_5(%arg0: i32) -> (i32, i32) {
    %c0_i32 = arith.constant 0 : i32
    %c0_i32_0 = arith.constant 0 : i32
    return %arg0, %c0_i32 : i32, i32
  }
}

</mosaic_0001>

<bundles_post_ra>
// kernel: tpu_custom_call.1
= control target key start
LH: loop header
LB: loop body
LE: loop exit
PB: predicated region body
PF: predicated region fallthrough
CT: control target
= control target key end

     0   :  { %10 = vsyncpa [#allocation3], 0  ;;  %s1066_s0 = inlined_call_operand.hbm [shape: f32[32,128], index: 0, kind: input, shape index: {}]   ;;  %s1067_s1 = inlined_call_operand.hbm [shape: f32[128,384], index: 1, kind: input, shape index: {}]   ;;  %s1068_s2 = inlined_call_operand.vmem [shape: f32[1,384], index: 2, kind: input, shape index: {}]   ;;  %s1069_s3 = inlined_call_operand.hbm [shape: f32[384,128], index: 3, kind: input, shape index: {}]   ;;  %s1070_s4 = inlined_call_operand.vmem [shape: f32[1,128], index: 4, kind: input, shape index: {}]   ;;  %s1071_s5 = inlined_call_operand.hbm [shape: f32[32,128], index: 5, kind: output, shape index: {}]  }
   0x1   :  { %11 = vsyncpa [#allocation6], 0 }
   0x2   :  { %12 = vsyncpa [#allocation4], 0  ;;  %s956_s18 = smov [#allocation5]   ;;  %s862_s22 = scalar_lea.hbm %s1067_s1, 6144 }
   0x3   :  { %s30_s19 = sshll.u32 %s956_s18, 4  ;;  %p863_p0 = scmp.ne.s32.totalorder %s1067_s1, %s862_s22  ;;  %s31_s19 = int_to_ptr.vmem [resolvable:$true] %s30_s19 }
   0x4   :  { %p866_p1 = scmp.lt.u32.totalorder %s862_s22, %s1067_s1 }
   0x6   :  { %p868_p2 = pnand %p866_p1, %p863_p0 }
   0x8   :  { %871 = shalt.err (!%p868_p2)
}
   0x9   :  { %s872_s27 = scalar_lea.vmem %s31_s19, 6144  ;;  %p877_p4 = scmp.lt.s32.totalorder %s31_s19, %s31_s19 }
   0xa   :  { %p873_p3 = scmp.ne.s32.totalorder %s31_s19, %s872_s27  ;;  %p878_p5 = scmp.lt.s32.totalorder %s872_s27, %s872_s27 }
   0xc   :  { %p879_p6 = por %p878_p5, %p877_p4 }
   0xe   :  { %p880_p7 = pnand %p879_p6, %p873_p3 }
  0x10   :  { %883 = shalt.err (!%p880_p7)
}
  0x11   :  { %s957_s28 = smov 384   ;;  %s958_s29 = smov 24  }
  0x12   :  { %36 = dma.hbm_to_vmem [thread:$0]  %s1067_s1, 6144, %s31_s19, [#allocation6], %s957_s28, %s957_s28, %s958_s29  }
  0x13   :  { %s959_s7 = smov [#allocation2]   ;;  %s884_s11 = scalar_lea.hbm %s1066_s0, 512 }
  0x14   :  { %s18_s8 = sshll.u32 %s959_s7, 4  ;;  %p885_p8 = scmp.ne.s32.totalorder %s1066_s0, %s884_s11  ;;  %s19_s8 = int_to_ptr.vmem [resolvable:$true] %s18_s8 }
  0x15   :  { %p888_p9 = scmp.lt.u32.totalorder %s884_s11, %s1066_s0 }
  0x17   :  { %p890_p10 = pnand %p888_p9, %p885_p8 }
  0x19   :  { %893 = shalt.err (!%p890_p10)
}
  0x1a   :  { %s894_s16 = scalar_lea.vmem %s19_s8, 512  ;;  %p899_p12 = scmp.lt.s32.totalorder %s19_s8, %s19_s8 }
  0x1b   :  { %p895_p11 = scmp.ne.s32.totalorder %s19_s8, %s894_s16  ;;  %p900_p13 = scmp.lt.s32.totalorder %s894_s16, %s894_s16 }
  0x1d   :  { %p901_p0 = por %p900_p13, %p899_p12 }
  0x1f   :  { %p902_p1 = pnand %p901_p0, %p895_p11 }
  0x21   :  { %905 = shalt.err (!%p902_p1)
}
  0x22   :  { %s960_s1 = smov 128   ;;  %s961_s17 = smov 8  }
  0x23   :  { %24 = dma.hbm_to_vmem [thread:$0]  %s1066_s0, 512, %s19_s8, [#allocation3], %s960_s1, %s960_s1, %s961_s17  }
  0x24   :  { %s962_s20 = smov [#allocation7]   ;;  %s906_s24 = scalar_lea.hbm %s1069_s3, 6144 }
  0x25   :  { %s44_s21 = sshll.u32 %s962_s20, 4  ;;  %p907_p2 = scmp.ne.s32.totalorder %s1069_s3, %s906_s24  ;;  %s45_s21 = int_to_ptr.vmem [resolvable:$true] %s44_s21 }
  0x26   :  { %p910_p3 = scmp.lt.u32.totalorder %s906_s24, %s1069_s3 }
  0x28   :  { %p912_p4 = pnand %p910_p3, %p907_p2 }
  0x2a   :  { %915 = shalt.err (!%p912_p4)
}
  0x2b   :  { %s916_s29 = scalar_lea.vmem %s45_s21, 6144  ;;  %p921_p6 = scmp.lt.s32.totalorder %s45_s21, %s45_s21 }
  0x2c   :  { %p917_p5 = scmp.ne.s32.totalorder %s45_s21, %s916_s29  ;;  %p922_p7 = scmp.lt.s32.totalorder %s916_s29, %s916_s29 }
  0x2e   :  { %p923_p8 = por %p922_p7, %p921_p6 }
  0x30   :  { %p924_p9 = pnand %p923_p8, %p917_p5 }
  0x32   :  { %927 = shalt.err (!%p924_p9)
}
  0x33   :  { %50 = dma.hbm_to_vmem [thread:$0]  %s1069_s3, 6144, %s45_s21, [#allocation6], %s960_s1, %s960_s1, %s961_s17  }
  0x34   :  { %950 = dma.done.wait [#allocation3], 512  }
  0x35   :  { %951 = vsyncadd [#allocation3], 4294966784 }
  0x36   :  { %952 = dma.done.wait [#allocation6], 12288  }
  0x37   :  { %953 = vsyncadd [#allocation6], 4294955008  ;;  %v963_v0 = vmov 0.0   ;;  %v67_v1 = vld [vmem:[#allocation5 + $0x8] sm:$0xff]  ;;  %v70_v2 = vld [vmem:[#allocation5 + $0x20] sm:$0xff] }
  0x38   :  { %195 = vmatprep.mubr.f32.mxu0 %v963_v0  ;;  %v66_v3 = vld [vmem:[#allocation5] sm:$0xff]  ;;  %v725_v4 = vpack.c.bf16 %v70_v2, %v67_v1  ;;  %v69_v5 = vld [vmem:[#allocation5 + $0x18] sm:$0xff]  ;;  %v76_v7 = vld [vmem:[#allocation5 + $0x50] sm:$0xff] }
  0x39   :  { %v73_v6 = vld [vmem:[#allocation5 + $0x38] sm:$0xff]  ;;  %v727_v8 = vpack.c.bf16 %v69_v5, %v66_v3  ;;  %v68_v10 = vld [vmem:[#allocation5 + $0x10] sm:$0xff]  ;;  %v71_v11 = vld [vmem:[#allocation5 + $0x28] sm:$0xff] }
  0x3a   :  { %v729_v9 = vpack.c.bf16 %v76_v7, %v73_v6  ;;  %v72_v12 = vld [vmem:[#allocation5 + $0x30] sm:$0xff]  ;;  %726 = vmatprep.subr.bf16.mxu0 %v725_v4  ;;  %v757_v13 = vpack.c.bf16 %v71_v11, %v68_v10  ;;  %v75_v14 = vld [vmem:[#allocation5 + $0x48] sm:$0xff]  ;;  %v82_v16 = vld [vmem:[#allocation5 + $0x80] sm:$0xff] }
  0x3b   :  { %v79_v15 = vld [vmem:[#allocation5 + $0x68] sm:$0xff]  ;;  %728 = vmatpush1.bf16.msra.mxu0 %v727_v8  ;;  %v731_v17 = vpack.c.bf16 %v75_v14, %v72_v12  ;;  %v74_v18 = vld [vmem:[#allocation5 + $0x40] sm:$0xff]  ;;  %v77_v19 = vld [vmem:[#allocation5 + $0x58] sm:$0xff] }
  0x3c   :  { %730 = vmatprep.subr.bf16.mxu0 %v729_v9  ;;  %758 = vmatprep.subr.bf16.mxu1 %v757_v13  ;;  %v733_v20 = vpack.c.bf16 %v82_v16, %v79_v15  ;;  %v761_v21 = vpack.c.bf16 %v77_v19, %v74_v18  ;;  %v78_v22 = vld [vmem:[#allocation5 + $0x60] sm:$0xff]  ;;  %v81_v23 = vld [vmem:[#allocation5 + $0x78] sm:$0xff]  ;;  %v88_v25 = vld [vmem:[#allocation5 + $0xb0] sm:$0xff] }
  0x3d   :  { %v85_v24 = vld [vmem:[#allocation5 + $0x98] sm:$0xff]  ;;  %760 = vmatpush3.bf16.msra.mxu1 %v757_v13  ;;  %v80_v26 = vld [vmem:[#allocation5 + $0x70] sm:$0xff]  ;;  %v83_v27 = vld [vmem:[#allocation5 + $0x88] sm:$0xff]  ;;  %v735_v29 = vpack.c.bf16 %v81_v23, %v78_v22 }
  0x3e   :  { %762 = vmatprep.subr.bf16.mxu1 %v761_v21  ;;  %v765_v28 = vpack.c.bf16 %v83_v27, %v80_v26  ;;  %v86_v30 = vld [vmem:[#allocation5 + $0xa0] sm:$0xff]  ;;  %v89_v31 = vld [vmem:[#allocation5 + $0xb8] sm:$0xff]  ;;  %v737_v32 = vpack.c.bf16 %v88_v25, %v85_v24  ;;  %v84_v33 = vld [vmem:[#allocation5 + $0x90] sm:$0xff] }
  0x3f   :  { %732 = vmatpush1.bf16.msra.mxu0 %v731_v17  ;;  %v87_v34 = vld [vmem:[#allocation5 + $0xa8] sm:$0xff]  ;;  %v94_v36 = vld [vmem:[#allocation5 + $0xe0] sm:$0xff]  ;;  %v769_v37 = vpack.c.bf16 %v89_v31, %v86_v30  ;;  %v92_v39 = vld [vmem:[#allocation5 + $0xd0] sm:$0xff] }
  0x40   :  { %734 = vmatprep.subr.bf16.mxu0 %v733_v20  ;;  %v91_v35 = vld [vmem:[#allocation5 + $0xc8] sm:$0xff]  ;;  %v739_v38 = vpack.c.bf16 %v87_v34, %v84_v33  ;;  %v90_v42 = vld [vmem:[#allocation5 + $0xc0] sm:$0xff]  ;;  %v93_v43 = vld [vmem:[#allocation5 + $0xd8] sm:$0xff] }
  0x41   :  { %764 = vmatpush3.bf16.msra.mxu1 %v761_v21  ;;  %v95_v40 = vld [vmem:[#allocation5 + $0xe8] sm:$0xff]  ;;  %v741_v41 = vpack.c.bf16 %v94_v36, %v91_v35  ;;  %v97_v44 = vld [vmem:[#allocation5 + $0xf8] sm:$0xff]  ;;  %v100_v45 = vld [vmem:[#allocation5 + $0x110] sm:$0xff]  ;;  %v743_v48 = vpack.c.bf16 %v93_v43, %v90_v42 }
  0x42   :  { %766 = vmatprep.subr.bf16.mxu1 %v765_v28  ;;  %v773_v46 = vpack.c.bf16 %v95_v40, %v92_v39  ;;  %v1038_v47 = vld [vmem:[#allocation2] sm:$0xff]  ;;  %v101_v50 = vld [vmem:[#allocation5 + $0x118] sm:$0xff]  ;;  %v745_v51 = vpack.c.bf16 %v100_v45, %v97_v44  ;;  %v96_v52 = vld [vmem:[#allocation5 + $0xf0] sm:$0xff] }
  0x43   :  { %736 = vmatpush1.bf16.msra.mxu0 %v735_v29  ;;  %v98_v49 = vld [vmem:[#allocation5 + $0x100] sm:$0xff]  ;;  %681 = vmatprep.mubr.f32.mxu1 %v1038_v47  ;;  %v99_v53 = vld [vmem:[#allocation5 + $0x108] sm:$0xff]  ;;  %v104_v58 = vld [vmem:[#allocation5 + $0x130] sm:$0xff] }
  0x44   :  { %738 = vmatprep.subr.bf16.mxu0 %v737_v32  ;;  %v103_v54 = vld [vmem:[#allocation5 + $0x128] sm:$0xff]  ;;  %v106_v55 = vld [vmem:[#allocation5 + $0x140] sm:$0xff]  ;;  %v777_v56 = vpack.c.bf16 %v101_v50, %v98_v49  ;;  %v747_v57 = vpack.c.bf16 %v99_v53, %v96_v52  ;;  %v105_v62 = vld [vmem:[#allocation5 + $0x138] sm:$0xff] }
  0x45   :  { %768 = vmatpush3.bf16.msra.mxu1 %v765_v28  ;;  %v107_v59 = vld [vmem:[#allocation5 + $0x148] sm:$0xff]  ;;  %v749_v60 = vpack.c.bf16 %v106_v55, %v103_v54  ;;  %v102_v61 = vld [vmem:[#allocation5 + $0x120] sm:$0xff]  ;;  %v109_v63 = vld [vmem:[#allocation5 + $0x158] sm:$0xff] }
  0x46   :  { %770 = vmatprep.subr.bf16.mxu1 %v769_v37  ;;  %v112_v1 = vld [vmem:[#allocation5 + $0x170] sm:$0xff]  ;;  %v781_v2 = vpack.c.bf16 %v107_v59, %v104_v58  ;;  %v751_v3 = vpack.c.bf16 %v105_v62, %v102_v61  ;;  %v110_v4 = vld [vmem:[#allocation5 + $0x160] sm:$0xff]  ;;  %v113_v5 = vld [vmem:[#allocation5 + $0x178] sm:$0xff] }
  0x47   :  { %740 = vmatpush1.bf16.msra.mxu0 %v739_v38  ;;  %v753_v6 = vpack.c.bf16 %v112_v1, %v109_v63  ;;  %v108_v7 = vld [vmem:[#allocation5 + $0x150] sm:$0xff]  ;;  %v111_v8 = vld [vmem:[#allocation5 + $0x168] sm:$0xff]  ;;  %v333_v9 = vld [vmem:[#allocation7 + $0x80] sm:$0xff]  ;;  %v785_v11 = vpack.c.bf16 %v113_v5, %v110_v4 }
  0x48   :  { %742 = vmatprep.subr.bf16.mxu0 %v741_v41  ;;  %v334_v10 = vld [vmem:[#allocation7 + $0x88] sm:$0xff]  ;;  %v755_v12 = vpack.c.bf16 %v111_v8, %v108_v7  ;;  %v349_v13 = vld [vmem:[#allocation7 + $0x100] sm:$0xff]  ;;  %v335_v18 = vld [vmem:[#allocation7 + $0x90] sm:$0xff] }
  0x49   :  { %772 = vmatpush3.bf16.msra.mxu1 %v769_v37  ;;  %v350_v14 = vld [vmem:[#allocation7 + $0x108] sm:$0xff]  ;;  %v789_v15 = vpack.c.bf16 %v334_v10, %v333_v9  ;;  %v317_v16 = vld [vmem:[#allocation7] sm:$0xff]  ;;  %v336_v19 = vld [vmem:[#allocation7 + $0x98] sm:$0xff] }
  0x4a   :  { %774 = vmatprep.subr.bf16.mxu1 %v773_v46  ;;  %v318_v17 = vld [vmem:[#allocation7 + $0x8] sm:$0xff]  ;;  %v821_v20 = vpack.c.bf16 %v350_v14, %v349_v13  ;;  %v351_v22 = vld [vmem:[#allocation7 + $0x110] sm:$0xff]  ;;  %v352_v23 = vld [vmem:[#allocation7 + $0x118] sm:$0xff]  ;;  %v793_v24 = vpack.c.bf16 %v336_v19, %v335_v18 }
  0x4b   :  { %744 = vmatpush1.bf16.msra.mxu0 %v743_v48  ;;  %v791_v21 = vpack.c.bf16 %v318_v17, %v317_v16  ;;  %v319_v25 = vld [vmem:[#allocation7 + $0x10] sm:$0xff]  ;;  %v320_v26 = vld [vmem:[#allocation7 + $0x18] sm:$0xff]  ;;  %v63_v27 = vld [vmem:[#allocation2 + $0x8] sm:$0xff]  ;;  %v825_v30 = vpack.c.bf16 %v352_v23, %v351_v22  ;;  %v116_v22 = vlaneseq }
  0x4c   :  { %746 = vmatprep.subr.bf16.mxu0 %v745_v51  ;;  %v337_v28 = vld [vmem:[#allocation7 + $0xa0] sm:$0xff]  ;;  %v338_v29 = vld [vmem:[#allocation7 + $0xa8] sm:$0xff]  ;;  %v795_v31 = vpack.c.bf16 %v320_v26, %v319_v25  ;;  %v64_v34 = vld [vmem:[#allocation2 + $0x10] sm:$0xff] }
  0x4d   :  { %776 = vmatpush3.bf16.msra.mxu1 %v773_v46  ;;  %v353_v32 = vld [vmem:[#allocation7 + $0x120] sm:$0xff]  ;;  %v354_v33 = vld [vmem:[#allocation7 + $0x128] sm:$0xff]  ;;  %v797_v35 = vpack.c.bf16 %v338_v29, %v337_v28  ;;  %v65_v38 = vld [vmem:[#allocation2 + $0x18] sm:$0xff]  ;;  %v117_v23 = vshrl.u32 %v116_v22, 7 }
  0x4e   :  { %778 = vmatprep.subr.bf16.mxu1 %v777_v56  ;;  %v321_v36 = vld [vmem:[#allocation7 + $0x20] sm:$0xff]  ;;  %v322_v37 = vld [vmem:[#allocation7 + $0x28] sm:$0xff]  ;;  %v339_v39 = vld [vmem:[#allocation7 + $0xb0] sm:$0xff]  ;;  %v829_v41 = vpack.c.bf16 %v354_v33, %v353_v32 }
  0x4f   :  { %748 = vmatpush1.bf16.msra.mxu0 %v747_v57  ;;  %v340_v40 = vld [vmem:[#allocation7 + $0xb8] sm:$0xff]  ;;  %v799_v42 = vpack.c.bf16 %v322_v37, %v321_v36  ;;  %v355_v43 = vld [vmem:[#allocation7 + $0x130] sm:$0xff]  ;;  %v341_v48 = vld [vmem:[#allocation7 + $0xc0] sm:$0xff]  ;;  %v122_v26 = vsub.s32 1, %v117_v23 }
  0x50   :  { %750 = vmatprep.subr.bf16.mxu0 %v749_v60  ;;  %v356_v44 = vld [vmem:[#allocation7 + $0x138] sm:$0xff]  ;;  %v801_v45 = vpack.c.bf16 %v340_v40, %v339_v39  ;;  %v323_v46 = vld [vmem:[#allocation7 + $0x30] sm:$0xff]  ;;  %v342_v49 = vld [vmem:[#allocation7 + $0xc8] sm:$0xff] }
  0x51   :  { %780 = vmatpush3.bf16.msra.mxu1 %v777_v56  ;;  %v833_v50 = vpack.c.bf16 %v356_v44, %v355_v43  ;;  %v357_v52 = vld [vmem:[#allocation7 + $0x140] sm:$0xff]  ;;  %v358_v53 = vld [vmem:[#allocation7 + $0x148] sm:$0xff]  ;;  %v805_v54 = vpack.c.bf16 %v342_v49, %v341_v48  ;;  %v343_v57 = vld [vmem:[#allocation7 + $0xd0] sm:$0xff] }
  0x52   :  { %782 = vmatprep.subr.bf16.mxu1 %v781_v2  ;;  %v325_v55 = vld [vmem:[#allocation7 + $0x40] sm:$0xff]  ;;  %v326_v56 = vld [vmem:[#allocation7 + $0x48] sm:$0xff]  ;;  %v344_v58 = vld [vmem:[#allocation7 + $0xd8] sm:$0xff]  ;;  %v837_v59 = vpack.c.bf16 %v358_v53, %v357_v52 }
  0x53   :  { %752 = vmatpush1.bf16.msra.mxu0 %v751_v3  ;;  %v807_v60 = vpack.c.bf16 %v326_v56, %v325_v55  ;;  %v359_v61 = vld [vmem:[#allocation7 + $0x150] sm:$0xff]  ;;  %v360_v62 = vld [vmem:[#allocation7 + $0x158] sm:$0xff]  ;;  %v346_v3 = vld [vmem:[#allocation7 + $0xe8] sm:$0xff] }
  0x54   :  { %754 = vmatprep.subr.bf16.mxu0 %v753_v6  ;;  %v327_v63 = vld [vmem:[#allocation7 + $0x50] sm:$0xff]  ;;  %v328_v1 = vld [vmem:[#allocation7 + $0x58] sm:$0xff]  ;;  %v841_v4 = vpack.c.bf16 %v360_v62, %v359_v61  ;;  %v329_v7 = vld [vmem:[#allocation7 + $0x60] sm:$0xff] }
  0x55   :  { %784 = vmatpush3.bf16.msra.mxu1 %v781_v2  ;;  %v345_v2 = vld [vmem:[#allocation7 + $0xe0] sm:$0xff]  ;;  %v811_v5 = vpack.c.bf16 %v328_v1, %v327_v63  ;;  %v330_v8 = vld [vmem:[#allocation7 + $0x68] sm:$0xff]  ;;  %v347_v10 = vld [vmem:[#allocation7 + $0xf0] sm:$0xff] }
  0x56   :  { %786 = vmatprep.subr.bf16.mxu1 %v785_v11  ;;  %v813_v6 = vpack.c.bf16 %v346_v3, %v345_v2  ;;  %v815_v9 = vpack.c.bf16 %v330_v8, %v329_v7  ;;  %v362_v14 = vld [vmem:[#allocation7 + $0x168] sm:$0xff]  ;;  %v332_v16 = vld [vmem:[#allocation7 + $0x78] sm:$0xff]  ;;  %v363_v19 = vld [vmem:[#allocation7 + $0x170] sm:$0xff] }
  0x57   :  { %756 = vmatpush1.bf16.msra.mxu0 %v755_v12  ;;  %v361_v12 = vld [vmem:[#allocation7 + $0x160] sm:$0xff] }
  0x58   :  { %790 = vmatprep.subr.bf16.mxu0 %v789_v15  ;;  %v331_v15 = vld [vmem:[#allocation7 + $0x70] sm:$0xff]  ;;  %v845_v17 = vpack.c.bf16 %v362_v14, %v361_v12  ;;  %v114_v25 = vld [vmem:[%s1068_s2] sm:$0x7] }
  0x59   :  { %788 = vmatpush3.bf16.msra.mxu1 %v785_v11  ;;  %v348_v11 = vld [vmem:[#allocation7 + $0xf8] sm:$0xff]  ;;  %v819_v18 = vpack.c.bf16 %v332_v16, %v331_v15  ;;  %v123_v29 = vrot.slane %v114_v25, %v122_v26 }
  0x5a   :  { %196 = vmatmul.mubr.f32.vlgmr.msra.gmra.mrb[0].mxu0 %v1038_v47  ;;  %822 = vmatprep.subr.bf16.mxu1 %v821_v20  ;;  %v324_v47 = vld [vmem:[#allocation7 + $0x38] sm:$0xff]  ;;  %v817_v13 = vpack.c.bf16 %v348_v11, %v347_v10 }
  0x5b   :  { %201 = vmatprep.mubr.f32.mxu0 %v963_v0  ;;  %792 = vmatpush3.bf16.msra.mxu0 %v791_v21  ;;  %v803_v51 = vpack.c.bf16 %v324_v47, %v323_v46 }
  0x5c   :  { %682 = vmatmul.mubr.f32.vlgmr.msra.gmra.mrb[0].mxu1 %v63_v27  ;;  %794 = vmatprep.subr.bf16.mxu0 %v793_v24  ;;  %v118_v24 = vsub.s32 0, %v117_v23 }
  0x5d   :  { %684 = vmatprep.mubr.f32.mxu1 %v64_v34  ;;  %824 = vmatpush3.bf16.msra.mxu1 %v821_v20  ;;  %v364_v20 = vld [vmem:[#allocation7 + $0x178] sm:$0xff] }
  0x5e   :  { %202 = vmatmul.mubr.f32.gmra.mrb[2].mxu0 %v63_v27  ;;  %826 = vmatprep.subr.bf16.mxu1 %v825_v30  ;;  %v849_v21 = vpack.c.bf16 %v364_v20, %v363_v19  ;;  %v126_v27 = vsub.s32 2, %v117_v23  ;;  %v119_v28 = vrot.slane %v114_v25, %v118_v24 }
  0x5f   :  { %207 = vmatprep.mubr.f32.mxu0 %v963_v0  ;;  %796 = vmatpush3.bf16.msra.mxu0 %v795_v31 }
  0x60   :  { %685 = vmatmul.mubr.f32.gmra.mrb[2].mxu1 %v65_v38  ;;  %798 = vmatprep.subr.bf16.mxu0 %v797_v35 }
  0x61   :  { %828 = vmatpush3.bf16.msra.mxu1 %v825_v30  ;;  %v127_v30 = vrot.slane %v114_v25, %v126_v27 }
  0x62   :  { %208 = vmatmul.mubr.f32.gmra.mrb[4].mxu0 %v64_v34  ;;  %830 = vmatprep.subr.bf16.mxu1 %v829_v41 }
  0x63   :  { %213 = vmatprep.mubr.f32.mxu0 %v963_v0  ;;  %800 = vmatpush3.bf16.msra.mxu0 %v799_v42  ;;  %v809_v0 = vpack.c.bf16 %v344_v58, %v343_v57 }
  0x64   :  { %802 = vmatprep.subr.bf16.mxu0 %v801_v45 }
  0x65   :  { %832 = vmatpush3.bf16.msra.mxu1 %v829_v41 }
  0x66   :  { %214 = vmatmul.mubr.f32.gmra.mrb[6].mxu0 %v65_v38  ;;  %834 = vmatprep.subr.bf16.mxu1 %v833_v50 }
  0x67   :  { %804 = vmatpush3.bf16.msra.mxu0 %v803_v51 }
  0x68   :  { %806 = vmatprep.subr.bf16.mxu0 %v805_v54 }
  0x69   :  { %836 = vmatpush3.bf16.msra.mxu1 %v833_v50 }
  0x6a   :  { %838 = vmatprep.subr.bf16.mxu1 %v837_v59 }
  0x6b   :  { %808 = vmatpush3.bf16.msra.mxu0 %v807_v60 }
  0x6c   :  { %810 = vmatprep.subr.bf16.mxu0 %v809_v0 }
  0x6d   :  { %840 = vmatpush3.bf16.msra.mxu1 %v837_v59 }
  0x6e   :  { %842 = vmatprep.subr.bf16.mxu1 %v841_v4 }
  0x6f   :  { %812 = vmatpush3.bf16.msra.mxu0 %v811_v5  ;;  %v564_v5 = vld [vmem:[%s1070_s4] ss:$0 sm:$0xff]  ;;  %s964_s4 = smov [#allocation8]  }
  0x70   :  { %814 = vmatprep.subr.bf16.mxu0 %v813_v6  ;;  %s551_s8 = sshll.u32 %s964_s4, 4  ;;  %s552_s8 = int_to_ptr.vmem [resolvable:$true] %s551_s8 }
  0x71   :  { %844 = vmatpush3.bf16.msra.mxu1 %v841_v4  ;;  %s928_s9 = scalar_lea.vmem %s552_s8, 512  ;;  %p933_p11 = scmp.lt.s32.totalorder %s552_s8, %s552_s8 }
  0x72   :  { %846 = vmatprep.subr.bf16.mxu1 %v845_v17  ;;  %p929_p10 = scmp.ne.s32.totalorder %s552_s8, %s928_s9  ;;  %p934_p12 = scmp.lt.s32.totalorder %s928_s9, %s928_s9 }
  0x73   :  { %816 = vmatpush3.bf16.msra.mxu0 %v815_v9 }
  0x74   :  { %818 = vmatprep.subr.bf16.mxu0 %v817_v13  ;;  %p935_p13 = por %p934_p12, %p933_p11 }
  0x75   :  { %848 = vmatpush3.bf16.msra.mxu1 %v845_v17 }
  0x76   :  { %850 = vmatprep.subr.bf16.mxu1 %v849_v21  ;;  %p936_p0 = pnand %p935_p13, %p929_p10 }
  0x77   :  { %820 = vmatpush3.bf16.msra.mxu0 %v819_v18 }
  0x79   :  { %852 = vmatpush3.bf16.msra.mxu1 %v849_v21 }
 0x12d   :  { %v197_v31 = vpop.f32.mrb[0].mxu0 }
 0x12e   :  { %v198_v32 = vadd.f32 %v197_v31, %v119_v28  ;;  %v199_v33 = vpop.f32.mrb[1].mxu0 }
 0x12f   :  { %v200_v34 = vadd.f32 %v199_v33, %v123_v29  ;;  %v683_v35 = vpop.f32.mrb[0].mxu1 }
 0x130   :  { %v292_v36 = vadd.f32 %v683_v35, %v127_v30  ;;  %v286_v37 = vpop.f32.mrb[1].mxu1  ;;  %v305_v41 = vmax.f32 %v198_v32, 0.0 }
 0x131   :  { %v306_v38 = vmax.f32 %v200_v34, 0.0  ;;  %v203_v39 = vpop.f32.mrb[2].mxu0  ;;  %v287_v40 = vadd.f32 %v286_v37, %v127_v30 }
 0x132   :  { %v204_v42 = vadd.f32 %v203_v39, %v119_v28  ;;  %v310_v43 = vmax.f32 %v292_v36, 0.0  ;;  %v205_v44 = vpop.f32.mrb[3].mxu0 }
 0x133   :  { %v206_v45 = vadd.f32 %v205_v44, %v123_v29  ;;  %v307_v46 = vmax.f32 %v287_v40, 0.0  ;;  %436 = vmatprep.mubr.f32.mxu0 %v306_v38  ;;  %v686_v47 = vpop.f32.mrb[2].mxu1 }
 0x134   :  { %437 = vmatmul.mubr.f32.vlgmr.msra.gmra.mrb[8].mxu0 %v305_v41  ;;  %v302_v48 = vadd.f32 %v686_v47, %v127_v30  ;;  %v296_v49 = vpop.f32.mrb[3].mxu1  ;;  %v308_v53 = vmax.f32 %v204_v42, 0.0 }
 0x135   :  { %v309_v50 = vmax.f32 %v206_v45, 0.0  ;;  %v209_v51 = vpop.f32.mrb[4].mxu0  ;;  %719 = vmatprep.mubr.f32.mxu1 %v307_v46  ;;  %v297_v52 = vadd.f32 %v296_v49, %v127_v30 }
 0x136   :  { %v210_v54 = vadd.f32 %v209_v51, %v119_v28  ;;  %v211_v55 = vpop.f32.mrb[5].mxu0  ;;  %720 = vmatmul.mubr.f32.vlgmr.msra.gmra.mrb[4].mxu1 %v310_v43  ;;  %v316_v56 = vmax.f32 %v302_v48, 0.0 }
 0x137   :  { %v212_v57 = vadd.f32 %v211_v55, %v123_v29  ;;  %441 = vmatprep.mubr.f32.mxu0 %v309_v50  ;;  %v313_v58 = vmax.f32 %v297_v52, 0.0 }
 0x138   :  { %442 = vmatmul.mubr.f32.gmra.mrb[10].mxu0 %v308_v53  ;;  %v311_v61 = vmax.f32 %v210_v54, 0.0 }
 0x139   :  { %v312_v59 = vmax.f32 %v212_v57, 0.0  ;;  %v215_v60 = vpop.f32.mrb[6].mxu0  ;;  %722 = vmatprep.mubr.f32.mxu1 %v313_v58 }
 0x13a   :  { %v216_v62 = vadd.f32 %v215_v60, %v119_v28  ;;  %v217_v0 = vpop.f32.mrb[7].mxu0  ;;  %723 = vmatmul.mubr.f32.gmra.mrb[6].mxu1 %v316_v56 }
 0x13b   :  { %v218_v63 = vadd.f32 %v217_v0, %v123_v29  ;;  %446 = vmatprep.mubr.f32.mxu0 %v312_v59 }
 0x13c   :  { %447 = vmatmul.mubr.f32.gmra.mrb[12].mxu0 %v311_v61  ;;  %v314_v2 = vmax.f32 %v216_v62, 0.0 }
 0x13d   :  { %v315_v1 = vmax.f32 %v218_v63, 0.0 }
 0x13f   :  { %451 = vmatprep.mubr.f32.mxu0 %v315_v1 }
 0x140   :  { %452 = vmatmul.mubr.f32.gmra.mrb[14].mxu0 %v314_v2 }
 0x207   :  { %v617_v3 = vpop.f32.mrb[8].mxu0 }
 0x208   :  { %v618_v4 = vpop.f32.mrb[9].mxu0 }
 0x209   :  { %v619_v6 = vadd.f32 %v618_v4, %v617_v3  ;;  %v721_v7 = vpop.f32.mrb[4].mxu1 }
 0x20a   :  { %v523_v8 = vpop.f32.mrb[5].mxu1 }
 0x20b   :  { %v620_v9 = vpop.f32.mrb[10].mxu0  ;;  %v439_v10 = vadd.f32 %v619_v6, %v564_v5 }
 0x20c   :  { %v621_v11 = vpop.f32.mrb[11].mxu0 }
 0x20d   :  { %v622_v12 = vadd.f32 %v621_v11, %v620_v9  ;;  %v524_v13 = vadd.f32 %v523_v8, %v439_v10  ;;  %v724_v14 = vpop.f32.mrb[6].mxu1 }
 0x20e   :  { %v533_v15 = vpop.f32.mrb[7].mxu1 }
 0x20f   :  { %v444_v16 = vadd.f32 %v622_v12, %v564_v5  ;;  %542 = vst [vmem:[#allocation8] sm:$0xff] %v524_v13  ;;  %v623_v17 = vpop.f32.mrb[12].mxu0 }
 0x210   :  { %v624_v18 = vpop.f32.mrb[13].mxu0 }
 0x211   :  { %v529_v19 = vadd.f32 %v721_v7, %v444_v16  ;;  %v625_v20 = vadd.f32 %v624_v18, %v623_v17 }
 0x213   :  { %543 = vst [vmem:[#allocation8 + $0x8] sm:$0xff] %v529_v19  ;;  %v626_v21 = vpop.f32.mrb[14].mxu0  ;;  %v449_v22 = vadd.f32 %v625_v20, %v564_v5 }
 0x214   :  { %v627_v23 = vpop.f32.mrb[15].mxu0 }
 0x215   :  { %v628_v24 = vadd.f32 %v627_v23, %v626_v21  ;;  %v534_v25 = vadd.f32 %v533_v15, %v449_v22 }
 0x217   :  { %v454_v26 = vadd.f32 %v628_v24, %v564_v5  ;;  %544 = vst [vmem:[#allocation8 + $0x10] sm:$0xff] %v534_v25 }
 0x219   :  { %v539_v27 = vadd.f32 %v724_v14, %v454_v26 }
 0x21b   :  { %545 = vst [vmem:[#allocation8 + $0x18] sm:$0xff] %v539_v27 }
 0x21c   :  { %939 = shalt.err (!%p936_p0)
}
 0x21d   :  { %s940_s12 = scalar_lea.hbm %s1071_s5, 512 }
 0x21e   :  { %p941_p1 = scmp.ne.s32.totalorder %s1071_s5, %s940_s12  ;;  %p944_p2 = scmp.lt.u32.totalorder %s940_s12, %s1071_s5 }
 0x220   :  { %p946_p3 = pnand %p944_p2, %p941_p1 }
 0x222   :  { %949 = shalt.err (!%p946_p3)
}
 0x223   :  { %557 = dma.vmem_to_hbm [thread:$0]  %s552_s8, 512, %s1071_s5, [#allocation4], %s960_s1, %s960_s1, %s961_s17  }
 0x224   :  { %954 = dma.done.wait [#allocation4], 512  }
 0x225   :  { %955 = vsyncadd [#allocation4], 4294966784 }
 0x226   :  { %561 = vsyncpa [#allocation3], 1 }
 0x227   :  { %562 = vsyncpa [#allocation6], 1 }
 0x228   :  { %563 = vsyncpa [#allocation4], 1 }

</bundles_post_ra>
